<compile_context>
chip_gen: v5e
topology: v5e:2x2
jax: 0.10.0
libtpu: 0.0.40
codegen_flags: <defaults>
</compile_context>

<pallas_src>
import jax
import jax.numpy as jnp
from jax import lax
from jax.experimental import pallas as pl
from jax.experimental.pallas import tpu as pltpu


def _round_up(x, m):
    return ((x + m - 1) // m) * m


_SCRATCH_MARGIN = 4 << 20  # headroom for Mosaic internal scratch / semaphores


def _vmem_budget_bytes():
    """~70% of physical per-TensorCore VMEM (safe v7x fallback = 64 MiB)."""
    try:
        physical = pltpu.get_tpu_info().vmem_capacity_bytes
    except Exception:  # interpret mode / older runtimes
        physical = 64 << 20
    return int(physical * 0.70)


def _choose_class_tile(num_classes, in_feats, w_itemsize, budget):
    """Pick a lane-dense class tile TN and padded class dim Cpad (TN | Cpad)."""
    cpad128 = _round_up(max(num_classes, 128), 128)
    if cpad128 * in_feats * w_itemsize <= budget // 3:
        # Whole (padded) class dim kept resident in VMEM: one class tile.
        return cpad128, cpad128
    # Weight too big to keep resident: tile the class dim.  256-granular tiles
    # keep the 256-wide MXU N dimension full on v6e/v7x (128 is already
    # optimal on v5e's 128x128 MXU).
    tn = 1024
    while tn > 256 and 2 * tn * in_feats * w_itemsize > budget // 3:
        tn //= 2
    return tn, _round_up(max(num_classes, tn), tn)


def _choose_batch_tile(B, F, TN, x_isz, o_isz, w_resident_bytes, budget):
    """Largest TB whose double-buffered x/out tiles + resident weight fit the
    VMEM budget, capped so the batch grid keeps >=4 steps (pipeline overlap +
    megacore sharding)."""
    if B <= 8:
        return B
    per_row = 2 * F * x_isz + 2 * TN * o_isz          # double-buffered x + out
    avail = max(budget - _SCRATCH_MARGIN - w_resident_bytes, per_row * 8)
    tb_mem = max(8, (avail // per_row) // 8 * 8)
    tb_split = max(8, _round_up(pl.cdiv(B, 4), 8))    # >= 4 batch grid steps
    return int(min(1024, tb_mem, tb_split, _round_up(B, 8)))


def _linear_kernel(x_ref, w_ref, b_ref, o_ref):
    # x_ref: (TB, F); w_ref: (TN, F); b_ref: (1, TN); o_ref: (TB, TN).
    # Contract on F of both operands (== x @ W^T): no transpose op needed,
    # Mosaic feeds the second operand to the MXU transposed.
    acc = lax.dot_general(
        x_ref[...], w_ref[...],
        dimension_numbers=(((1,), (1,)), ((), ())),
        preferred_element_type=jnp.float32,           # f32 MXU accumulation
    )                                                 # (TB, TN)
    o_ref[...] = (acc + b_ref[...]).astype(o_ref.dtype)


def pad_linear_params(weight, bias, *, compute_dtype=None, budget=None):
    """Zero-pad (C, F) weight / (C,) bias so the class dim is lane-dense and a
    multiple of the class tile.  Hoist this out of the per-call hot path: each
    jnp.pad materializes an extra HBM copy of W."""
    C, F = weight.shape
    budget = _vmem_budget_bytes() if budget is None else budget
    w = weight if compute_dtype is None else weight.astype(compute_dtype)
    _, Cpad = _choose_class_tile(C, F, w.dtype.itemsize, budget)
    w_pad = jnp.pad(w, ((0, Cpad - C), (0, 0)))                       # (Cpad, F)
    b_pad = jnp.pad(bias.astype(jnp.float32), (0, Cpad - C)).reshape(1, Cpad)
    return w_pad, b_pad


def linear_classifier_padded(x2d, w_pad, b_pad, num_classes, *, out_dtype=None):
    """out = x2d @ w_pad.T + b_pad with pre-padded params, sliced to C cols."""
    B, F = x2d.shape
    Cpad, Fw = w_pad.shape
    assert F == Fw, "weight in_feats mismatch"
    out_dtype = x2d.dtype if out_dtype is None else out_dtype
    o_isz = jnp.dtype(out_dtype).itemsize

    budget = _vmem_budget_bytes()
    TN, _ = _choose_class_tile(num_classes, F, w_pad.dtype.itemsize, budget)
    TN = min(TN, Cpad)
    assert Cpad % TN == 0, "padded class dim must be a multiple of the class tile"
    nC = Cpad // TN

    # Single-buffer weight/bias when resident (constant block index) -> halves
    # their VMEM footprint and buys a larger batch tile; double-buffer when the
    # class axis is tiled so the weight DMA overlaps compute.
    w_resident_bytes = (1 if nC == 1 else 2) * TN * F * w_pad.dtype.itemsize
    wb_buffers = pl.Buffered(1) if nC == 1 else pl.Buffered(2)

    TB = _choose_batch_tile(B, F, TN, x2d.dtype.itemsize, o_isz,
                            w_resident_bytes, budget)
    nB = pl.cdiv(B, TB)

    flops = 2 * B * F * Cpad
    w_reads = w_pad.size * w_pad.dtype.itemsize * (1 if nC == 1 else nB)
    bytes_accessed = (x2d.size * x2d.dtype.itemsize
                      + w_reads
                      + b_pad.size * 4
                      + B * Cpad * o_isz)

    out_padded = pl.pallas_call(
        _linear_kernel,
        out_shape=jax.ShapeDtypeStruct((B, Cpad), out_dtype),
        grid_spec=pltpu.PrefetchScalarGridSpec(
            num_scalar_prefetch=0,
            grid=(nB, nC),
            in_specs=[
                # x: tiled over batch; constant across the inner class axis
                # (Pallas skips the re-DMA when the block index is unchanged).
                pl.BlockSpec((TB, F), lambda i, j: (i, 0)),
                # weight / bias: resident when nC == 1, else class-tiled.
                pl.BlockSpec((TN, F), lambda i, j: (j, 0),
                             pipeline_mode=wb_buffers),
                pl.BlockSpec((1, TN), lambda i, j: (0, j),
                             pipeline_mode=wb_buffers),
            ],
            out_specs=pl.BlockSpec((TB, TN), lambda i, j: (i, j)),
        ),
        compiler_params=pltpu.CompilerParams(
            # Every (i, j) output tile is independent -> megacore sharding.
            dimension_semantics=("parallel", "parallel"),
            # Budgeted below physical VMEM (64 MiB/TC on v7x) so Mosaic keeps
            # headroom for its internal scratch.
            vmem_limit_bytes=budget,
        ),
        cost_estimate=pl.CostEstimate(
            flops=flops, transcendentals=0, bytes_accessed=bytes_accessed),
    )(x2d, w_pad, b_pad)

    # Drop the zero-padded classes.
    return out_padded[:, :num_classes]


def linear_classifier(x, weight, bias, *, compute_dtype=None, out_dtype=None):
    """PyTorch nn.Linear semantics: out = x @ weight.T + bias.

    Handles arbitrary leading batch dims (like nn.Linear).  For repeated
    inference with fixed weights, call pad_linear_params once and reuse
    linear_classifier_padded directly to avoid re-padding W every call.
    compute_dtype=jnp.bfloat16 is recommended on v5e (bf16 MXU, half the HBM
    traffic); accumulation stays f32 either way.
    """
    *lead, F = x.shape
    C = weight.shape[0]
    x2d = x.reshape(-1, F)
    if compute_dtype is not None:
        x2d = x2d.astype(compute_dtype)
    w_pad, b_pad = pad_linear_params(weight, bias, compute_dtype=compute_dtype)
    out2d = linear_classifier_padded(x2d, w_pad, b_pad, C, out_dtype=out_dtype)
    return out2d.reshape(*lead, C)


if __name__ == "__main__":
    key = jax.random.PRNGKey(0)
    k_x, k_w, k_b = jax.random.split(key, 3)

    batch = 8
    in_feats = 32
    num_classes = 3

    x = jax.random.normal(k_x, (batch, in_feats), dtype=jnp.float32)
    # Deterministic init mimicking nn.Linear's uniform(-1/sqrt(F), 1/sqrt(F)).
    bound = 1.0 / (in_feats ** 0.5)
    weight = jax.random.uniform(k_w, (num_classes, in_feats),
                                minval=-bound, maxval=bound, dtype=jnp.float32)
    bias = jax.random.uniform(k_b, (num_classes,),
                              minval=-bound, maxval=bound, dtype=jnp.float32)

    out = linear_classifier(x, weight, bias)
    out = jax.block_until_ready(out)

    # Correctness check against plain JAX reference.
    ref = x @ weight.T + bias
    assert out.shape == (batch, num_classes)
    assert jnp.allclose(out, ref, atol=1e-5, rtol=1e-5)
    print("KERNEL_OK")
</pallas_src>

<mosaic_0001>
module attributes {stable_mosaic.version = 11 : i64} {
  func.func @_linear_kernel(%arg0: i32, %arg1: i32, %arg2: memref<8x32xf32, #tpu.memory_space<vmem>>, %arg3: memref<128x32xf32, #tpu.memory_space<vmem>>, %arg4: memref<1x128xf32, #tpu.memory_space<vmem>>, %arg5: memref<8x128xf32, #tpu.memory_space<vmem>>) attributes {dimension_semantics = [#tpu.dimension_semantics<parallel>, #tpu.dimension_semantics<parallel>], iteration_bounds = array<i64: 1, 1>, scalar_prefetch = 0 : i64, scratch_operands = 0 : i64, tpu.core_type = #tpu.core_type<tc>, window_params = [{transform_indices = @transform_0, window_bounds = array<i64: 8, 32>}, {pipeline_mode = #tpu.pipeline_mode<synchronous>, transform_indices = @transform_1, window_bounds = array<i64: 128, 32>}, {pipeline_mode = #tpu.pipeline_mode<synchronous>, transform_indices = @transform_2, window_bounds = array<i64: 1, 128>}, {transform_indices = @transform_3, window_bounds = array<i64: 8, 128>}]} {
    %c0 = arith.constant 0 : index
    %c0_0 = arith.constant 0 : index
    %0 = vector.load %arg2[%c0, %c0_0] : memref<8x32xf32, #tpu.memory_space<vmem>>, vector<8x32xf32>
    %c0_1 = arith.constant 0 : index
    %c0_2 = arith.constant 0 : index
    %1 = vector.load %arg3[%c0_1, %c0_2] : memref<128x32xf32, #tpu.memory_space<vmem>>, vector<128x32xf32>
    %cst = arith.constant dense<0.000000e+00> : vector<8x128xf32>
    %2 = tpu.matmul %0, %1, %cst {dimension_numbers = #tpu.dot_dimension_numbers<[1], [1], [0], [0], [0, 0, 1, 0], [], []>} : vector<8x32xf32>, vector<128x32xf32>, vector<8x128xf32> -> vector<8x128xf32>
    %c0_3 = arith.constant 0 : index
    %c0_4 = arith.constant 0 : index
    %3 = vector.load %arg4[%c0_3, %c0_4] : memref<1x128xf32, #tpu.memory_space<vmem>>, vector<1x128xf32>
    %4 = vector.broadcast %3 : vector<1x128xf32> to vector<8x128xf32>
    %5 = arith.addf %2, %4 : vector<8x128xf32>
    %c0_5 = arith.constant 0 : index
    %c0_6 = arith.constant 0 : index
    %6 = vector.load %arg5[%c0_5, %c0_6] : memref<8x128xf32, #tpu.memory_space<vmem>>, vector<8x128xf32>
    tpu.vector_store %arg5[%c0_5, %c0_6], %5 {strides = array<i32>} : memref<8x128xf32, #tpu.memory_space<vmem>>, vector<8x128xf32>,
    return
  }
  func.func @transform_0(%arg0: i32, %arg1: i32) -> (i32, i32) {
    %c0_i32 = arith.constant 0 : i32
    %c0_i32_0 = arith.constant 0 : i32
    return %arg0, %c0_i32 : i32, i32
  }
  func.func @transform_1(%arg0: i32, %arg1: i32) -> (i32, i32) {
    %c0_i32 = arith.constant 0 : i32
    %c0_i32_0 = arith.constant 0 : i32
    return %arg1, %c0_i32 : i32, i32
  }
  func.func @transform_2(%arg0: i32, %arg1: i32) -> (i32, i32) {
    %c0_i32 = arith.constant 0 : i32
    %c0_i32_0 = arith.constant 0 : i32
    return %c0_i32, %arg1 : i32, i32
  }
  func.func @transform_3(%arg0: i32, %arg1: i32) -> (i32, i32) {
    %c0_i32 = arith.constant 0 : i32
    return %arg0, %arg1 : i32, i32
  }
}

</mosaic_0001>

<bundles_post_ra>
// kernel: tpu_custom_call.1
= control target key start
LH: loop header
LB: loop body
LE: loop exit
PB: predicated region body
PF: predicated region fallthrough
CT: control target
= control target key end

     0   :  { %vm36_vm0 = vcmask 261120   ;;  %s265_s0 = inlined_call_operand.vmem [shape: f32[8,32], index: 0, kind: input, shape index: {}]   ;;  %s266_s1 = inlined_call_operand.vmem [shape: f32[128,32], index: 1, kind: input, shape index: {}]   ;;  %s267_s2 = inlined_call_operand.vmem [shape: f32[1,128], index: 2, kind: input, shape index: {}]   ;;  %s268_s3 = inlined_call_operand.hbm [shape: f32[8,128], index: 3, kind: output, shape index: {}]  }
   0x1   :  { %v31_v0 = vld [vmem:[%s266_s1 + $0x78] sm:$0xff]  ;;  %v30_v1 = vld [vmem:[%s266_s1 + $0x70] sm:$0xff] }
   0x2   :  { %125 = vmatpush.xpose.msk.msra.mxu0 %vm36_vm0, %v31_v0 }
   0x3   :  { %8 = vsyncpa [#allocation3], 0  ;;  %v29_v2 = vld [vmem:[%s266_s1 + $0x68] sm:$0xff]  ;;  %v28_v3 = vld [vmem:[%s266_s1 + $0x60] sm:$0xff]  ;;  %s170_s21 = smov [#allocation2]   ;;  %s116_s25 = sshll.u32 %s268_s3, 4  ;;  %s117_s25 = int_to_ptr.hbm [resolvable:$true] %s116_s25 }
   0x4   :  { %v27_v4 = vld [vmem:[%s266_s1 + $0x58] sm:$0xff]  ;;  %v26_v5 = vld [vmem:[%s266_s1 + $0x50] sm:$0xff]  ;;  %v25_v6 = vld [vmem:[%s266_s1 + $0x48] sm:$0xff]  ;;  %s114_s22 = sshll.u32 %s170_s21, 4  ;;  %s115_s22 = int_to_ptr.vmem [resolvable:$true] %s114_s22 }
   0x5   :  { %v24_v7 = vld [vmem:[%s266_s1 + $0x40] sm:$0xff]  ;;  %v23_v8 = vld [vmem:[%s266_s1 + $0x38] sm:$0xff]  ;;  %v22_v9 = vld [vmem:[%s266_s1 + $0x30] sm:$0xff] }
   0x6   :  { %126 = vmatpush.xpose.msk.msra.mxu0 %vm36_vm0, %v30_v1  ;;  %v21_v10 = vld [vmem:[%s266_s1 + $0x28] sm:$0xff]  ;;  %v20_v11 = vld [vmem:[%s266_s1 + $0x20] sm:$0xff]  ;;  %v19_v12 = vld [vmem:[%s266_s1 + $0x18] sm:$0xff] }
   0x7   :  { %v18_v13 = vld [vmem:[%s266_s1 + $0x10] sm:$0xff]  ;;  %v17_v14 = vld [vmem:[%s266_s1 + $0x8] sm:$0xff]  ;;  %v16_v15 = vld [vmem:[%s266_s1] sm:$0xff] }
   0x8   :  { %v15_v16 = vld [vmem:[%s265_s0] sm:$0xff] }
   0x9   :  { %v143_v17 = vld [vmem:[%s267_s2] ss:$0 sm:$0xff] }
   0xa   :  { %127 = vmatpush.xpose.msk.msra.mxu0 %vm36_vm0, %v29_v2 }
   0xe   :  { %128 = vmatpush.xpose.msk.msra.mxu0 %vm36_vm0, %v28_v3 }
  0x12   :  { %129 = vmatpush.xpose.msk.msra.mxu0 %vm36_vm0, %v27_v4 }
  0x16   :  { %130 = vmatpush.xpose.msk.msra.mxu0 %vm36_vm0, %v26_v5 }
  0x1a   :  { %131 = vmatpush.xpose.msk.msra.mxu0 %vm36_vm0, %v25_v6 }
  0x1e   :  { %132 = vmatpush.xpose.msk.msra.mxu0 %vm36_vm0, %v24_v7 }
  0x22   :  { %133 = vmatpush.xpose.msk.msra.mxu0 %vm36_vm0, %v23_v8 }
  0x26   :  { %134 = vmatpush.xpose.msk.msra.mxu0 %vm36_vm0, %v22_v9 }
  0x2a   :  { %135 = vmatpush.xpose.msk.msra.mxu0 %vm36_vm0, %v21_v10 }
  0x2e   :  { %136 = vmatpush.xpose.msk.msra.mxu0 %vm36_vm0, %v20_v11 }
  0x32   :  { %137 = vmatpush.xpose.msk.msra.mxu0 %vm36_vm0, %v19_v12 }
  0x36   :  { %138 = vmatpush.xpose.msk.msra.mxu0 %vm36_vm0, %v18_v13 }
  0x3a   :  { %139 = vmatpush.xpose.msk.msra.mxu0 %vm36_vm0, %v17_v14 }
  0x3e   :  { %140 = vmatpush.xpose.msk.msra.mxu0 %vm36_vm0, %v16_v15 }
  0x41   :  { %141 = vmatmul.msk.f32.vlgmr.msra.gmra.mxu0 %vm36_vm0, %v15_v16 }
  0xbe   :  { %v105_v18 = vpop.f32.mrf.mxu0 }
  0xbf   :  { %v106_v19 = vadd.f32 %v143_v17, %v105_v18 }
  0xc1   :  { %108 = vst [vmem:[#allocation2] sm:$0xff] %v106_v19 }
  0xc2   :  { %119 = dma.vmem_to_hbm [thread:$0]  %s115_s22, 128, %s117_s25, [#allocation3]  }
  0xc3   :  { %168 = dma.done.wait [#allocation3], 128  }
  0xc4   :  { %169 = vsyncadd [#allocation3], 4294967168 }
  0xc5   :  { %124 = vsyncpa [#allocation3], 1 }

</bundles_post_ra>
